<compile_context>
chip_gen: v5e
topology: v5e:2x2
jax: 0.10.0
libtpu: 0.0.40
codegen_flags: <defaults>
</compile_context>

<pallas_src>
import functools

import jax
import jax.numpy as jnp
from jax.experimental import pallas as pl
from jax.experimental.pallas import tpu as pltpu


def _layernorm(x, eps=1e-6):
    mu = jnp.mean(x, axis=-1, keepdims=True)
    var = jnp.mean((x - mu) ** 2, axis=-1, keepdims=True)
    return (x - mu) * jax.lax.rsqrt(var + eps)


def _gelu_exact(x):
    # PyTorch nn.GELU() default is the exact erf-based formulation.
    return 0.5 * x * (1.0 + jax.lax.erf(x * 0.7071067811865476))


def dit_block_kernel(x_tile_ref, x_full_ref, mods_ref,
                     q_w_ref, q_b_ref, kv_w_ref, kv_b_ref,
                     proj_w_ref, proj_b_ref,
                     mlp_w1_ref, mlp_b1_ref, mlp_w2_ref, mlp_b2_ref,
                     o_ref,
                     q_s_ref, k_s_ref, v_s_ref,
                     *, num_heads):
    f32 = jnp.float32
    cdt = q_w_ref.dtype                     # compute dtype for MXU operands (f32 or bf16)
    D = x_tile_ref.shape[2]
    H = num_heads
    hd = D // H

    # Modulation vectors: (6, D) f32; rows 1 and 4 already hold (1 + scale).
    mods = mods_ref[0]
    shift_msa, scale1_msa, gate_msa = mods[0:1, :], mods[1:2, :], mods[2:3, :]
    shift_mlp, scale1_mlp, gate_mlp = mods[3:4, :], mods[4:5, :], mods[5:6, :]

    # ---- K/V for the full sequence: built once per batch element, reused by every Q tile.
    @pl.when(pl.program_id(1) == 0)
    def _build_kv():
        xf = x_full_ref[0].astype(f32)                                       # (N, D)
        modf = _layernorm(xf) * scale1_msa + shift_msa
        kv = jnp.dot(modf.astype(cdt), kv_w_ref[...],
                     preferred_element_type=f32) + kv_b_ref[...]             # (N, 2D)
        for h in range(H):                                                   # head-major scratch
            k_s_ref[h] = kv[:, h * hd:(h + 1) * hd].astype(k_s_ref.dtype)
            v_s_ref[h] = kv[:, D + h * hd:D + (h + 1) * hd].astype(v_s_ref.dtype)

    # ---- attention branch for this token tile
    xt = x_tile_ref[0].astype(f32)                                           # (TN, D)
    modq = _layernorm(xt) * scale1_msa + shift_msa
    q = jnp.dot(modq.astype(cdt), q_w_ref[...],
                preferred_element_type=f32) + q_b_ref[...]                   # (TN, D)
    q = q * (hd ** -0.5)
    for h in range(H):
        q_s_ref[h] = q[:, h * hd:(h + 1) * hd].astype(q_s_ref.dtype)

    # Head-batched NT matmuls (batch dim leading, no explicit transposes).
    s = jnp.einsum('hqd,hkd->hqk', q_s_ref[...], k_s_ref[...],
                   preferred_element_type=f32)                               # (H, TN, N)
    s = s - jnp.max(s, axis=-1, keepdims=True)
    p = jnp.exp(s)
    a = p * pl.reciprocal(jnp.sum(p, axis=-1, keepdims=True), approx=True)
    ao = jnp.einsum('hqk,hkd->hqd', a.astype(cdt), v_s_ref[...],
                    preferred_element_type=f32)                              # (H, TN, hd)

    # Output projection: accumulate per head against sublane row-slices of proj_w
    # (fuses the head concat into the projection; slices are hd-row aligned).
    attn = None
    for h in range(H):
        t = jnp.dot(ao[h].astype(cdt), proj_w_ref[h * hd:(h + 1) * hd, :],
                    preferred_element_type=f32)
        attn = t if attn is None else attn + t
    attn = attn + proj_b_ref[...]

    x1 = xt + gate_msa * attn

    # ---- MLP branch
    mod2 = _layernorm(x1) * scale1_mlp + shift_mlp
    h1 = jnp.dot(mod2.astype(cdt), mlp_w1_ref[...],
                 preferred_element_type=f32) + mlp_b1_ref[...]
    h1 = _gelu_exact(h1)
    y = jnp.dot(h1.astype(cdt), mlp_w2_ref[...],
                preferred_element_type=f32) + mlp_b2_ref[...]

    o_ref[0] = (x1 + gate_mlp * y).astype(o_ref.dtype)


def dit_block(x, c, params, num_heads, *, compute_dtype=jnp.float32, token_tile=256):
    B, N, D = x.shape
    H = num_heads
    assert D % H == 0
    hd = D // H

    # adaLN hoisted out of the kernel (the M=1 GEMV would use 1/128..1/256 of the MXU
    # rows and keep the 6*D-wide ada_w resident in VMEM).  Scales pre-offset by +1.
    silu_c = (c * jax.nn.sigmoid(c)).astype(jnp.float32)
    ada = silu_c @ params['ada_w'].astype(jnp.float32) + params['ada_b'].astype(jnp.float32)
    mods = ada.reshape(B, 6, D)
    mods = mods.at[:, 1, :].add(1.0)   # 1 + scale_msa
    mods = mods.at[:, 4, :].add(1.0)   # 1 + scale_mlp

    cdt = compute_dtype
    qkv_w, qkv_b = params['qkv_w'], params['qkv_b']
    q_w, kv_w = qkv_w[:, :D].astype(cdt), qkv_w[:, D:].astype(cdt)
    q_b, kv_b = qkv_b[:, :D].astype(jnp.float32), qkv_b[:, D:].astype(jnp.float32)
    proj_w = params['proj_w'].astype(cdt)
    proj_b = params['proj_b'].astype(jnp.float32)
    w1 = params['mlp_w1'].astype(cdt)
    b1 = params['mlp_b1'].astype(jnp.float32)
    w2 = params['mlp_w2'].astype(cdt)
    b2 = params['mlp_b2'].astype(jnp.float32)

    # Token-tile the Q / output side; require an exact split (toy shapes use TN = N).
    # TODO(synk): add K-side masking to support N not divisible by the token tile.
    tn = token_tile if (token_tile is not None and N >= token_tile and N % token_tile == 0) else N
    grid = (B, N // tn)

    def full2d(arr):
        # Grid-invariant weight / bias blocks (whole array resident in VMEM).
        # TODO(synk): request single buffering (pipeline_mode=pl.Buffered(1)) for these
        # invariant operands to halve their resident footprint on v7x's 64 MiB VMEM.
        return pl.BlockSpec(arr.shape, lambda b, i: (0, 0))

    kernel = functools.partial(dit_block_kernel, num_heads=H)

    return pl.pallas_call(
        kernel,
        out_shape=jax.ShapeDtypeStruct((B, N, D), x.dtype),
        grid=grid,
        in_specs=[
            pl.BlockSpec((1, tn, D), lambda b, i: (b, i, 0)),   # x: Q/output token tile
            pl.BlockSpec((1, N, D), lambda b, i: (b, 0, 0)),    # x: full sequence (K/V build)
            pl.BlockSpec((1, 6, D), lambda b, i: (b, 0, 0)),    # adaLN modulation vectors
            full2d(q_w), full2d(q_b), full2d(kv_w), full2d(kv_b),
            full2d(proj_w), full2d(proj_b),
            full2d(w1), full2d(b1), full2d(w2), full2d(b2),
        ],
        out_specs=pl.BlockSpec((1, tn, D), lambda b, i: (b, i, 0)),
        scratch_shapes=[
            pltpu.VMEM((H, tn, hd), cdt),   # Q, head-major, per tile
            pltpu.VMEM((H, N, hd), cdt),    # K, head-major, persists across token tiles
            pltpu.VMEM((H, N, hd), cdt),    # V, head-major, persists across token tiles
        ],
        compiler_params=pltpu.CompilerParams(
            dimension_semantics=("parallel", "arbitrary"),
            vmem_limit_bytes=56 * 1024 * 1024,
        ),
    )(x, x, mods, q_w, q_b, kv_w, kv_b, proj_w, proj_b, w1, b1, w2, b2)


def dit_block_ref(x, c, params, num_heads):
    """Pure-JAX reference mirroring the PyTorch DiTBlock.forward semantics."""
    B, N, D = x.shape
    hd = D // num_heads

    silu_c = c * jax.nn.sigmoid(c)
    ada = silu_c @ params['ada_w'] + params['ada_b'][0]
    shift_msa, scale_msa, gate_msa, shift_mlp, scale_mlp, gate_mlp = jnp.split(ada, 6, axis=1)

    def modulate(v, shift, scale):
        return v * (1.0 + scale[:, None, :]) + shift[:, None, :]

    xn = _layernorm(x)
    mod = modulate(xn, shift_msa, scale_msa)
    qkv = mod @ params['qkv_w'] + params['qkv_b'][0]
    qkv = qkv.reshape(B, N, 3, num_heads, hd).transpose(2, 0, 3, 1, 4)  # (3, B, h, N, hd)
    q, k, v = qkv[0], qkv[1], qkv[2]
    attn = jax.nn.softmax((q * hd ** -0.5) @ k.transpose(0, 1, 3, 2), axis=-1)
    ao = (attn @ v).transpose(0, 2, 1, 3).reshape(B, N, D)
    ao = ao @ params['proj_w'] + params['proj_b'][0]
    x1 = x + gate_msa[:, None, :] * ao

    xn2 = _layernorm(x1)
    mod2 = modulate(xn2, shift_mlp, scale_mlp)
    h = mod2 @ params['mlp_w1'] + params['mlp_b1'][0]
    h = _gelu_exact(h)
    y = h @ params['mlp_w2'] + params['mlp_b2'][0]
    return x1 + gate_mlp[:, None, :] * y


if __name__ == "__main__":
    B, N, D = 2, 8, 32           # batch, tokens, hidden_size (small functional test shape)
    num_heads = 4
    mlp_hidden = int(D * 4.0)

    key = jax.random.PRNGKey(0)
    ks = jax.random.split(key, 12)

    def init(k, shape, s=0.02):
        return s * jax.random.normal(k, shape, jnp.float32)

    params = {
        'ada_w':  init(ks[0], (D, 6 * D)),
        'ada_b':  init(ks[1], (1, 6 * D)),
        'qkv_w':  init(ks[2], (D, 3 * D)),
        'qkv_b':  init(ks[3], (1, 3 * D)),
        'proj_w': init(ks[4], (D, D)),
        'proj_b': init(ks[5], (1, D)),
        'mlp_w1': init(ks[6], (D, mlp_hidden)),
        'mlp_b1': init(ks[7], (1, mlp_hidden)),
        'mlp_w2': init(ks[8], (mlp_hidden, D)),
        'mlp_b2': init(ks[9], (1, D)),
    }

    x = jax.random.normal(ks[10], (B, N, D), jnp.float32)
    c = jax.random.normal(ks[11], (B, D), jnp.float32)

    ref = dit_block_ref(x, c, params, num_heads)

    # f32 weights / compute path (tight tolerance).
    out_f32 = jax.block_until_ready(dit_block(x, c, params, num_heads,
                                              compute_dtype=jnp.float32))
    assert out_f32.shape == (B, N, D)
    err32 = float(jnp.max(jnp.abs(out_f32 - ref)))
    assert jnp.allclose(out_f32, ref, rtol=1e-4, atol=5e-5), f"f32 max abs err {err32}"

    # bf16 weights / MXU-operand path with f32 accumulation (looser tolerance).
    out_bf16 = jax.block_until_ready(dit_block(x, c, params, num_heads,
                                               compute_dtype=jnp.bfloat16))
    errbf = float(jnp.max(jnp.abs(out_bf16 - ref)))
    assert jnp.allclose(out_bf16, ref, rtol=2e-2, atol=5e-3), f"bf16 max abs err {errbf}"

    print("KERNEL_OK")
</pallas_src>

<mosaic_0001>
module attributes {stable_mosaic.version = 11 : i64} {
  func.func @dit_block_kernel(%arg0: i32, %arg1: i32, %arg2: memref<1x8x32xf32, #tpu.memory_space<vmem>>, %arg3: memref<1x8x32xf32, #tpu.memory_space<vmem>>, %arg4: memref<1x6x32xf32, #tpu.memory_space<vmem>>, %arg5: memref<32x32xf32, #tpu.memory_space<vmem>>, %arg6: memref<1x32xf32, #tpu.memory_space<vmem>>, %arg7: memref<32x64xf32, #tpu.memory_space<vmem>>, %arg8: memref<1x64xf32, #tpu.memory_space<vmem>>, %arg9: memref<32x32xf32, #tpu.memory_space<vmem>>, %arg10: memref<1x32xf32, #tpu.memory_space<vmem>>, %arg11: memref<32x128xf32, #tpu.memory_space<vmem>>, %arg12: memref<1x128xf32, #tpu.memory_space<vmem>>, %arg13: memref<128x32xf32, #tpu.memory_space<vmem>>, %arg14: memref<1x32xf32, #tpu.memory_space<vmem>>, %arg15: memref<1x8x32xf32, #tpu.memory_space<vmem>>, %arg16: memref<4x8x8xf32, #tpu.memory_space<vmem>>, %arg17: memref<4x8x8xf32, #tpu.memory_space<vmem>>, %arg18: memref<4x8x8xf32, #tpu.memory_space<vmem>>) attributes {dimension_semantics = [#tpu.dimension_semantics<parallel>, #tpu.dimension_semantics<arbitrary>], iteration_bounds = array<i64: 2, 1>, scalar_prefetch = 0 : i64, scratch_operands = 3 : i64, tpu.core_type = #tpu.core_type<tc>, window_params = [{transform_indices = @transform_0, window_bounds = array<i64: 1, 8, 32>}, {transform_indices = @transform_1, window_bounds = array<i64: 1, 8, 32>}, {transform_indices = @transform_2, window_bounds = array<i64: 1, 6, 32>}, {pipeline_mode = #tpu.pipeline_mode<synchronous>, transform_indices = @transform_3, window_bounds = array<i64: 32, 32>}, {pipeline_mode = #tpu.pipeline_mode<synchronous>, transform_indices = @transform_4, window_bounds = array<i64: 1, 32>}, {pipeline_mode = #tpu.pipeline_mode<synchronous>, transform_indices = @transform_5, window_bounds = array<i64: 32, 64>}, {pipeline_mode = #tpu.pipeline_mode<synchronous>, transform_indices = @transform_6, window_bounds = array<i64: 1, 64>}, {pipeline_mode = #tpu.pipeline_mode<synchronous>, transform_indices = @transform_7, window_bounds = array<i64: 32, 32>}, {pipeline_mode = #tpu.pipeline_mode<synchronous>, transform_indices = @transform_8, window_bounds = array<i64: 1, 32>}, {pipeline_mode = #tpu.pipeline_mode<synchronous>, transform_indices = @transform_9, window_bounds = array<i64: 32, 128>}, {pipeline_mode = #tpu.pipeline_mode<synchronous>, transform_indices = @transform_10, window_bounds = array<i64: 1, 128>}, {pipeline_mode = #tpu.pipeline_mode<synchronous>, transform_indices = @transform_11, window_bounds = array<i64: 128, 32>}, {pipeline_mode = #tpu.pipeline_mode<synchronous>, transform_indices = @transform_12, window_bounds = array<i64: 1, 32>}, {transform_indices = @transform_13, window_bounds = array<i64: 1, 8, 32>}]} {
    %c0 = arith.constant 0 : index
    %c0_0 = arith.constant 0 : index
    %c0_1 = arith.constant 0 : index
    %0 = vector.load %arg4[%c0, %c0_0, %c0_1] : memref<1x6x32xf32, #tpu.memory_space<vmem>>, vector<1x6x32xf32>
    %1 = vector.shape_cast %0 : vector<1x6x32xf32> to vector<6x32xf32>
    %2 = vector.extract_strided_slice %1 {offsets = [0, 0], sizes = [1, 32], strides = [1, 1]} : vector<6x32xf32> to vector<1x32xf32>
    %3 = vector.extract_strided_slice %1 {offsets = [1, 0], sizes = [1, 32], strides = [1, 1]} : vector<6x32xf32> to vector<1x32xf32>
    %4 = vector.extract_strided_slice %1 {offsets = [2, 0], sizes = [1, 32], strides = [1, 1]} : vector<6x32xf32> to vector<1x32xf32>
    %5 = vector.extract_strided_slice %1 {offsets = [3, 0], sizes = [1, 32], strides = [1, 1]} : vector<6x32xf32> to vector<1x32xf32>
    %6 = vector.extract_strided_slice %1 {offsets = [4, 0], sizes = [1, 32], strides = [1, 1]} : vector<6x32xf32> to vector<1x32xf32>
    %7 = vector.extract_strided_slice %1 {offsets = [5, 0], sizes = [1, 32], strides = [1, 1]} : vector<6x32xf32> to vector<1x32xf32>
    %c0_i32 = arith.constant 0 : i32
    %8 = arith.cmpi eq, %arg1, %c0_i32 : i32
    %9 = arith.extui %8 : i1 to i32
    %c0_i32_2 = arith.constant 0 : i32
    %10 = arith.cmpi ne, %9, %c0_i32_2 : i32
    scf.if %10 {
      %c0_70 = arith.constant 0 : index
      %c0_71 = arith.constant 0 : index
      %c0_72 = arith.constant 0 : index
      %144 = vector.load %arg3[%c0_70, %c0_71, %c0_72] : memref<1x8x32xf32, #tpu.memory_space<vmem>>, vector<1x8x32xf32>
      %145 = vector.shape_cast %144 : vector<1x8x32xf32> to vector<8x32xf32>
      %cst_73 = arith.constant dense<0.000000e+00> : vector<8xf32>
      %146 = vector.multi_reduction <add>, %145, %cst_73 [1] : vector<8x32xf32> to vector<8xf32>
      %147 = vector.shape_cast %146 : vector<8xf32> to vector<8x1xf32>
      %cst_74 = arith.constant 3.200000e+01 : f32
      %148 = vector.broadcast %cst_74 : f32 to vector<8x1xf32>
      %149 = arith.divf %147, %148 : vector<8x1xf32>
      %150 = vector.broadcast %149 : vector<8x1xf32> to vector<8x32xf32>
      %151 = arith.subf %145, %150 : vector<8x32xf32>
      %152 = arith.mulf %151, %151 : vector<8x32xf32>
      %cst_75 = arith.constant dense<0.000000e+00> : vector<8xf32>
      %153 = vector.multi_reduction <add>, %152, %cst_75 [1] : vector<8x32xf32> to vector<8xf32>
      %154 = vector.shape_cast %153 : vector<8xf32> to vector<8x1xf32>
      %cst_76 = arith.constant 3.200000e+01 : f32
      %155 = vector.broadcast %cst_76 : f32 to vector<8x1xf32>
      %156 = arith.divf %154, %155 : vector<8x1xf32>
      %157 = vector.broadcast %149 : vector<8x1xf32> to vector<8x32xf32>
      %158 = arith.subf %145, %157 : vector<8x32xf32>
      %cst_77 = arith.constant 9.99999997E-7 : f32
      %159 = vector.broadcast %cst_77 : f32 to vector<8x1xf32>
      %160 = arith.addf %156, %159 : vector<8x1xf32>
      %161 = math.rsqrt %160 : vector<8x1xf32>
      %162 = vector.broadcast %161 : vector<8x1xf32> to vector<8x32xf32>
      %163 = arith.mulf %158, %162 : vector<8x32xf32>
      %164 = vector.broadcast %3 : vector<1x32xf32> to vector<8x32xf32>
      %165 = arith.mulf %163, %164 : vector<8x32xf32>
      %166 = vector.broadcast %2 : vector<1x32xf32> to vector<8x32xf32>
      %167 = arith.addf %165, %166 : vector<8x32xf32>
      %c0_78 = arith.constant 0 : index
      %c0_79 = arith.constant 0 : index
      %168 = vector.load %arg7[%c0_78, %c0_79] : memref<32x64xf32, #tpu.memory_space<vmem>>, vector<32x64xf32>
      %cst_80 = arith.constant dense<0.000000e+00> : vector<8x64xf32>
      %169 = tpu.matmul %167, %168, %cst_80 {dimension_numbers = #tpu.dot_dimension_numbers<[1], [0], [0], [1], [0, 0, 1, 1], [], []>} : vector<8x32xf32>, vector<32x64xf32>, vector<8x64xf32> -> vector<8x64xf32>
      %c0_81 = arith.constant 0 : index
      %c0_82 = arith.constant 0 : index
      %170 = vector.load %arg8[%c0_81, %c0_82] : memref<1x64xf32, #tpu.memory_space<vmem>>, vector<1x64xf32>
      %171 = vector.broadcast %170 : vector<1x64xf32> to vector<8x64xf32>
      %172 = arith.addf %169, %171 : vector<8x64xf32>
      %173 = vector.extract_strided_slice %172 {offsets = [0, 0], sizes = [8, 8], strides = [1, 1]} : vector<8x64xf32> to vector<8x8xf32>
      %c0_83 = arith.constant 0 : index
      %c0_84 = arith.constant 0 : index
      %c0_85 = arith.constant 0 : index
      %174 = vector.load %arg17[%c0_83, %c0_84, %c0_85] : memref<4x8x8xf32, #tpu.memory_space<vmem>>, vector<1x8x8xf32>
      %175 = vector.shape_cast %174 : vector<1x8x8xf32> to vector<8x8xf32>
      %176 = vector.shape_cast %173 : vector<8x8xf32> to vector<1x8x8xf32>
      tpu.vector_store %arg17[%c0_83, %c0_84, %c0_85], %176 {strides = array<i32>} : memref<4x8x8xf32, #tpu.memory_space<vmem>>, vector<1x8x8xf32>,
      %177 = vector.extract_strided_slice %172 {offsets = [0, 32], sizes = [8, 8], strides = [1, 1]} : vector<8x64xf32> to vector<8x8xf32>
      %c0_86 = arith.constant 0 : index
      %c0_87 = arith.constant 0 : index
      %c0_88 = arith.constant 0 : index
      %178 = vector.load %arg18[%c0_86, %c0_87, %c0_88] : memref<4x8x8xf32, #tpu.memory_space<vmem>>, vector<1x8x8xf32>
      %179 = vector.shape_cast %178 : vector<1x8x8xf32> to vector<8x8xf32>
      %180 = vector.shape_cast %177 : vector<8x8xf32> to vector<1x8x8xf32>
      tpu.vector_store %arg18[%c0_86, %c0_87, %c0_88], %180 {strides = array<i32>} : memref<4x8x8xf32, #tpu.memory_space<vmem>>, vector<1x8x8xf32>,
      %181 = vector.extract_strided_slice %172 {offsets = [0, 8], sizes = [8, 8], strides = [1, 1]} : vector<8x64xf32> to vector<8x8xf32>
      %c1_89 = arith.constant 1 : index
      %c0_90 = arith.constant 0 : index
      %c0_91 = arith.constant 0 : index
      %182 = vector.load %arg17[%c1_89, %c0_90, %c0_91] : memref<4x8x8xf32, #tpu.memory_space<vmem>>, vector<1x8x8xf32>
      %183 = vector.shape_cast %182 : vector<1x8x8xf32> to vector<8x8xf32>
      %184 = vector.shape_cast %181 : vector<8x8xf32> to vector<1x8x8xf32>
      tpu.vector_store %arg17[%c1_89, %c0_90, %c0_91], %184 {strides = array<i32>} : memref<4x8x8xf32, #tpu.memory_space<vmem>>, vector<1x8x8xf32>,
      %185 = vector.extract_strided_slice %172 {offsets = [0, 40], sizes = [8, 8], strides = [1, 1]} : vector<8x64xf32> to vector<8x8xf32>
      %c1_92 = arith.constant 1 : index
      %c0_93 = arith.constant 0 : index
      %c0_94 = arith.constant 0 : index
      %186 = vector.load %arg18[%c1_92, %c0_93, %c0_94] : memref<4x8x8xf32, #tpu.memory_space<vmem>>, vector<1x8x8xf32>
      %187 = vector.shape_cast %186 : vector<1x8x8xf32> to vector<8x8xf32>
      %188 = vector.shape_cast %185 : vector<8x8xf32> to vector<1x8x8xf32>
      tpu.vector_store %arg18[%c1_92, %c0_93, %c0_94], %188 {strides = array<i32>} : memref<4x8x8xf32, #tpu.memory_space<vmem>>, vector<1x8x8xf32>,
      %189 = vector.extract_strided_slice %172 {offsets = [0, 16], sizes = [8, 8], strides = [1, 1]} : vector<8x64xf32> to vector<8x8xf32>
      %c2_95 = arith.constant 2 : index
      %c0_96 = arith.constant 0 : index
      %c0_97 = arith.constant 0 : index
      %190 = vector.load %arg17[%c2_95, %c0_96, %c0_97] : memref<4x8x8xf32, #tpu.memory_space<vmem>>, vector<1x8x8xf32>
      %191 = vector.shape_cast %190 : vector<1x8x8xf32> to vector<8x8xf32>
      %192 = vector.shape_cast %189 : vector<8x8xf32> to vector<1x8x8xf32>
      tpu.vector_store %arg17[%c2_95, %c0_96, %c0_97], %192 {strides = array<i32>} : memref<4x8x8xf32, #tpu.memory_space<vmem>>, vector<1x8x8xf32>,
      %193 = vector.extract_strided_slice %172 {offsets = [0, 48], sizes = [8, 8], strides = [1, 1]} : vector<8x64xf32> to vector<8x8xf32>
      %c2_98 = arith.constant 2 : index
      %c0_99 = arith.constant 0 : index
      %c0_100 = arith.constant 0 : index
      %194 = vector.load %arg18[%c2_98, %c0_99, %c0_100] : memref<4x8x8xf32, #tpu.memory_space<vmem>>, vector<1x8x8xf32>
      %195 = vector.shape_cast %194 : vector<1x8x8xf32> to vector<8x8xf32>
      %196 = vector.shape_cast %193 : vector<8x8xf32> to vector<1x8x8xf32>
      tpu.vector_store %arg18[%c2_98, %c0_99, %c0_100], %196 {strides = array<i32>} : memref<4x8x8xf32, #tpu.memory_space<vmem>>, vector<1x8x8xf32>,
      %197 = vector.extract_strided_slice %172 {offsets = [0, 24], sizes = [8, 8], strides = [1, 1]} : vector<8x64xf32> to vector<8x8xf32>
      %c3_101 = arith.constant 3 : index
      %c0_102 = arith.constant 0 : index
      %c0_103 = arith.constant 0 : index
      %198 = vector.load %arg17[%c3_101, %c0_102, %c0_103] : memref<4x8x8xf32, #tpu.memory_space<vmem>>, vector<1x8x8xf32>
      %199 = vector.shape_cast %198 : vector<1x8x8xf32> to vector<8x8xf32>
      %200 = vector.shape_cast %197 : vector<8x8xf32> to vector<1x8x8xf32>
      tpu.vector_store %arg17[%c3_101, %c0_102, %c0_103], %200 {strides = array<i32>} : memref<4x8x8xf32, #tpu.memory_space<vmem>>, vector<1x8x8xf32>,
      %201 = vector.extract_strided_slice %172 {offsets = [0, 56], sizes = [8, 8], strides = [1, 1]} : vector<8x64xf32> to vector<8x8xf32>
      %c3_104 = arith.constant 3 : index
      %c0_105 = arith.constant 0 : index
      %c0_106 = arith.constant 0 : index
      %202 = vector.load %arg18[%c3_104, %c0_105, %c0_106] : memref<4x8x8xf32, #tpu.memory_space<vmem>>, vector<1x8x8xf32>
      %203 = vector.shape_cast %202 : vector<1x8x8xf32> to vector<8x8xf32>
      %204 = vector.shape_cast %201 : vector<8x8xf32> to vector<1x8x8xf32>
      tpu.vector_store %arg18[%c3_104, %c0_105, %c0_106], %204 {strides = array<i32>} : memref<4x8x8xf32, #tpu.memory_space<vmem>>, vector<1x8x8xf32>,
    } else {
    }
    %c0_3 = arith.constant 0 : index
    %c0_4 = arith.constant 0 : index
    %c0_5 = arith.constant 0 : index
    %11 = vector.load %arg2[%c0_3, %c0_4, %c0_5] : memref<1x8x32xf32, #tpu.memory_space<vmem>>, vector<1x8x32xf32>
    %12 = vector.shape_cast %11 : vector<1x8x32xf32> to vector<8x32xf32>
    %cst = arith.constant dense<0.000000e+00> : vector<8xf32>
    %13 = vector.multi_reduction <add>, %12, %cst [1] : vector<8x32xf32> to vector<8xf32>
    %14 = vector.shape_cast %13 : vector<8xf32> to vector<8x1xf32>
    %cst_6 = arith.constant 3.200000e+01 : f32
    %15 = vector.broadcast %cst_6 : f32 to vector<8x1xf32>
    %16 = arith.divf %14, %15 : vector<8x1xf32>
    %17 = vector.broadcast %16 : vector<8x1xf32> to vector<8x32xf32>
    %18 = arith.subf %12, %17 : vector<8x32xf32>
    %19 = arith.mulf %18, %18 : vector<8x32xf32>
    %cst_7 = arith.constant dense<0.000000e+00> : vector<8xf32>
    %20 = vector.multi_reduction <add>, %19, %cst_7 [1] : vector<8x32xf32> to vector<8xf32>
    %21 = vector.shape_cast %20 : vector<8xf32> to vector<8x1xf32>
    %cst_8 = arith.constant 3.200000e+01 : f32
    %22 = vector.broadcast %cst_8 : f32 to vector<8x1xf32>
    %23 = arith.divf %21, %22 : vector<8x1xf32>
    %24 = vector.broadcast %16 : vector<8x1xf32> to vector<8x32xf32>
    %25 = arith.subf %12, %24 : vector<8x32xf32>
    %cst_9 = arith.constant 9.99999997E-7 : f32
    %26 = vector.broadcast %cst_9 : f32 to vector<8x1xf32>
    %27 = arith.addf %23, %26 : vector<8x1xf32>
    %28 = math.rsqrt %27 : vector<8x1xf32>
    %29 = vector.broadcast %28 : vector<8x1xf32> to vector<8x32xf32>
    %30 = arith.mulf %25, %29 : vector<8x32xf32>
    %31 = vector.broadcast %3 : vector<1x32xf32> to vector<8x32xf32>
    %32 = arith.mulf %30, %31 : vector<8x32xf32>
    %33 = vector.broadcast %2 : vector<1x32xf32> to vector<8x32xf32>
    %34 = arith.addf %32, %33 : vector<8x32xf32>
    %c0_10 = arith.constant 0 : index
    %c0_11 = arith.constant 0 : index
    %35 = vector.load %arg5[%c0_10, %c0_11] : memref<32x32xf32, #tpu.memory_space<vmem>>, vector<32x32xf32>
    %cst_12 = arith.constant dense<0.000000e+00> : vector<8x32xf32>
    %36 = tpu.matmul %34, %35, %cst_12 {dimension_numbers = #tpu.dot_dimension_numbers<[1], [0], [0], [1], [0, 0, 1, 1], [], []>} : vector<8x32xf32>, vector<32x32xf32>, vector<8x32xf32> -> vector<8x32xf32>
    %c0_13 = arith.constant 0 : index
    %c0_14 = arith.constant 0 : index
    %37 = vector.load %arg6[%c0_13, %c0_14] : memref<1x32xf32, #tpu.memory_space<vmem>>, vector<1x32xf32>
    %38 = vector.broadcast %37 : vector<1x32xf32> to vector<8x32xf32>
    %39 = arith.addf %36, %38 : vector<8x32xf32>
    %cst_15 = arith.constant 0.353553385 : f32
    %40 = vector.broadcast %cst_15 : f32 to vector<8x32xf32>
    %41 = arith.mulf %39, %40 : vector<8x32xf32>
    %42 = vector.extract_strided_slice %41 {offsets = [0, 0], sizes = [8, 8], strides = [1, 1]} : vector<8x32xf32> to vector<8x8xf32>
    %c0_16 = arith.constant 0 : index
    %c0_17 = arith.constant 0 : index
    %c0_18 = arith.constant 0 : index
    %43 = vector.load %arg16[%c0_16, %c0_17, %c0_18] : memref<4x8x8xf32, #tpu.memory_space<vmem>>, vector<1x8x8xf32>
    %44 = vector.shape_cast %43 : vector<1x8x8xf32> to vector<8x8xf32>
    %45 = vector.shape_cast %42 : vector<8x8xf32> to vector<1x8x8xf32>
    tpu.vector_store %arg16[%c0_16, %c0_17, %c0_18], %45 {strides = array<i32>} : memref<4x8x8xf32, #tpu.memory_space<vmem>>, vector<1x8x8xf32>,
    %46 = vector.extract_strided_slice %41 {offsets = [0, 8], sizes = [8, 8], strides = [1, 1]} : vector<8x32xf32> to vector<8x8xf32>
    %c1 = arith.constant 1 : index
    %c0_19 = arith.constant 0 : index
    %c0_20 = arith.constant 0 : index
    %47 = vector.load %arg16[%c1, %c0_19, %c0_20] : memref<4x8x8xf32, #tpu.memory_space<vmem>>, vector<1x8x8xf32>
    %48 = vector.shape_cast %47 : vector<1x8x8xf32> to vector<8x8xf32>
    %49 = vector.shape_cast %46 : vector<8x8xf32> to vector<1x8x8xf32>
    tpu.vector_store %arg16[%c1, %c0_19, %c0_20], %49 {strides = array<i32>} : memref<4x8x8xf32, #tpu.memory_space<vmem>>, vector<1x8x8xf32>,
    %50 = vector.extract_strided_slice %41 {offsets = [0, 16], sizes = [8, 8], strides = [1, 1]} : vector<8x32xf32> to vector<8x8xf32>
    %c2 = arith.constant 2 : index
    %c0_21 = arith.constant 0 : index
    %c0_22 = arith.constant 0 : index
    %51 = vector.load %arg16[%c2, %c0_21, %c0_22] : memref<4x8x8xf32, #tpu.memory_space<vmem>>, vector<1x8x8xf32>
    %52 = vector.shape_cast %51 : vector<1x8x8xf32> to vector<8x8xf32>
    %53 = vector.shape_cast %50 : vector<8x8xf32> to vector<1x8x8xf32>
    tpu.vector_store %arg16[%c2, %c0_21, %c0_22], %53 {strides = array<i32>} : memref<4x8x8xf32, #tpu.memory_space<vmem>>, vector<1x8x8xf32>,
    %54 = vector.extract_strided_slice %41 {offsets = [0, 24], sizes = [8, 8], strides = [1, 1]} : vector<8x32xf32> to vector<8x8xf32>
    %c3 = arith.constant 3 : index
    %c0_23 = arith.constant 0 : index
    %c0_24 = arith.constant 0 : index
    %55 = vector.load %arg16[%c3, %c0_23, %c0_24] : memref<4x8x8xf32, #tpu.memory_space<vmem>>, vector<1x8x8xf32>
    %56 = vector.shape_cast %55 : vector<1x8x8xf32> to vector<8x8xf32>
    %57 = vector.shape_cast %54 : vector<8x8xf32> to vector<1x8x8xf32>
    tpu.vector_store %arg16[%c3, %c0_23, %c0_24], %57 {strides = array<i32>} : memref<4x8x8xf32, #tpu.memory_space<vmem>>, vector<1x8x8xf32>,
    %c0_25 = arith.constant 0 : index
    %c0_26 = arith.constant 0 : index
    %c0_27 = arith.constant 0 : index
    %58 = vector.load %arg16[%c0_25, %c0_26, %c0_27] : memref<4x8x8xf32, #tpu.memory_space<vmem>>, vector<4x8x8xf32>
    %c0_28 = arith.constant 0 : index
    %c0_29 = arith.constant 0 : index
    %c0_30 = arith.constant 0 : index
    %59 = vector.load %arg17[%c0_28, %c0_29, %c0_30] : memref<4x8x8xf32, #tpu.memory_space<vmem>>, vector<4x8x8xf32>
    "tpu.trace_start"() <{level = 10 : i32, message = "hqd,hkd->hqk"}> : () -> ()
    %cst_31 = arith.constant dense<0.000000e+00> : vector<4x8x8xf32>
    %60 = tpu.matmul %58, %59, %cst_31 {dimension_numbers = #tpu.dot_dimension_numbers<[2], [2], [1], [1], [0, 0, 0, 1, 1, 1], [0], [0]>} : vector<4x8x8xf32>, vector<4x8x8xf32>, vector<4x8x8xf32> -> vector<4x8x8xf32>
    "tpu.trace_stop"() : () -> ()
    %cst_32 = arith.constant dense<0xFF800000> : vector<4x8xf32>
    %61 = vector.multi_reduction <maximumf>, %60, %cst_32 [2] : vector<4x8x8xf32> to vector<4x8xf32>
    %62 = vector.shape_cast %61 : vector<4x8xf32> to vector<4x8x1xf32>
    %63 = vector.broadcast %62 : vector<4x8x1xf32> to vector<4x8x8xf32>
    %64 = arith.subf %60, %63 : vector<4x8x8xf32>
    %65 = math.exp %64 : vector<4x8x8xf32>
    %cst_33 = arith.constant dense<0.000000e+00> : vector<4x8xf32>
    %66 = vector.multi_reduction <add>, %65, %cst_33 [2] : vector<4x8x8xf32> to vector<4x8xf32>
    %67 = vector.shape_cast %66 : vector<4x8xf32> to vector<4x8x1xf32>
    %68 = tpu.reciprocal %67 {approx = true} : vector<4x8x1xf32> -> vector<4x8x1xf32>
    %69 = vector.broadcast %68 : vector<4x8x1xf32> to vector<4x8x8xf32>
    %70 = arith.mulf %65, %69 : vector<4x8x8xf32>
    %c0_34 = arith.constant 0 : index
    %c0_35 = arith.constant 0 : index
    %c0_36 = arith.constant 0 : index
    %71 = vector.load %arg18[%c0_34, %c0_35, %c0_36] : memref<4x8x8xf32, #tpu.memory_space<vmem>>, vector<4x8x8xf32>
    "tpu.trace_start"() <{level = 10 : i32, message = "hqk,hkd->hqd"}> : () -> ()
    %cst_37 = arith.constant dense<0.000000e+00> : vector<4x8x8xf32>
    %72 = tpu.matmul %70, %71, %cst_37 {dimension_numbers = #tpu.dot_dimension_numbers<[2], [1], [1], [2], [0, 0, 0, 1, 1, 2], [0], [0]>} : vector<4x8x8xf32>, vector<4x8x8xf32>, vector<4x8x8xf32> -> vector<4x8x8xf32>
    "tpu.trace_stop"() : () -> ()
    %73 = vector.extract_strided_slice %72 {offsets = [0, 0, 0], sizes = [1, 8, 8], strides = [1, 1, 1]} : vector<4x8x8xf32> to vector<1x8x8xf32>
    %74 = vector.shape_cast %73 : vector<1x8x8xf32> to vector<8x8xf32>
    %c0_38 = arith.constant 0 : index
    %c0_39 = arith.constant 0 : index
    %75 = vector.load %arg9[%c0_38, %c0_39] : memref<32x32xf32, #tpu.memory_space<vmem>>, vector<8x32xf32>
    %cst_40 = arith.constant dense<0.000000e+00> : vector<8x32xf32>
    %76 = tpu.matmul %74, %75, %cst_40 {dimension_numbers = #tpu.dot_dimension_numbers<[1], [0], [0], [1], [0, 0, 1, 1], [], []>} : vector<8x8xf32>, vector<8x32xf32>, vector<8x32xf32> -> vector<8x32xf32>
    %77 = vector.extract_strided_slice %72 {offsets = [1, 0, 0], sizes = [1, 8, 8], strides = [1, 1, 1]} : vector<4x8x8xf32> to vector<1x8x8xf32>
    %78 = vector.shape_cast %77 : vector<1x8x8xf32> to vector<8x8xf32>
    %c8 = arith.constant 8 : index
    %c0_41 = arith.constant 0 : index
    %79 = vector.load %arg9[%c8, %c0_41] : memref<32x32xf32, #tpu.memory_space<vmem>>, vector<8x32xf32>
    %cst_42 = arith.constant dense<0.000000e+00> : vector<8x32xf32>
    %80 = tpu.matmul %78, %79, %cst_42 {dimension_numbers = #tpu.dot_dimension_numbers<[1], [0], [0], [1], [0, 0, 1, 1], [], []>} : vector<8x8xf32>, vector<8x32xf32>, vector<8x32xf32> -> vector<8x32xf32>
    %81 = arith.addf %76, %80 : vector<8x32xf32>
    %82 = vector.extract_strided_slice %72 {offsets = [2, 0, 0], sizes = [1, 8, 8], strides = [1, 1, 1]} : vector<4x8x8xf32> to vector<1x8x8xf32>
    %83 = vector.shape_cast %82 : vector<1x8x8xf32> to vector<8x8xf32>
    %c16 = arith.constant 16 : index
    %c0_43 = arith.constant 0 : index
    %84 = vector.load %arg9[%c16, %c0_43] : memref<32x32xf32, #tpu.memory_space<vmem>>, vector<8x32xf32>
    %cst_44 = arith.constant dense<0.000000e+00> : vector<8x32xf32>
    %85 = tpu.matmul %83, %84, %cst_44 {dimension_numbers = #tpu.dot_dimension_numbers<[1], [0], [0], [1], [0, 0, 1, 1], [], []>} : vector<8x8xf32>, vector<8x32xf32>, vector<8x32xf32> -> vector<8x32xf32>
    %86 = arith.addf %81, %85 : vector<8x32xf32>
    %87 = vector.extract_strided_slice %72 {offsets = [3, 0, 0], sizes = [1, 8, 8], strides = [1, 1, 1]} : vector<4x8x8xf32> to vector<1x8x8xf32>
    %88 = vector.shape_cast %87 : vector<1x8x8xf32> to vector<8x8xf32>
    %c24 = arith.constant 24 : index
    %c0_45 = arith.constant 0 : index
    %89 = vector.load %arg9[%c24, %c0_45] : memref<32x32xf32, #tpu.memory_space<vmem>>, vector<8x32xf32>
    %cst_46 = arith.constant dense<0.000000e+00> : vector<8x32xf32>
    %90 = tpu.matmul %88, %89, %cst_46 {dimension_numbers = #tpu.dot_dimension_numbers<[1], [0], [0], [1], [0, 0, 1, 1], [], []>} : vector<8x8xf32>, vector<8x32xf32>, vector<8x32xf32> -> vector<8x32xf32>
    %91 = arith.addf %86, %90 : vector<8x32xf32>
    %c0_47 = arith.constant 0 : index
    %c0_48 = arith.constant 0 : index
    %92 = vector.load %arg10[%c0_47, %c0_48] : memref<1x32xf32, #tpu.memory_space<vmem>>, vector<1x32xf32>
    %93 = vector.broadcast %92 : vector<1x32xf32> to vector<8x32xf32>
    %94 = arith.addf %91, %93 : vector<8x32xf32>
    %95 = vector.broadcast %4 : vector<1x32xf32> to vector<8x32xf32>
    %96 = arith.mulf %95, %94 : vector<8x32xf32>
    %97 = arith.addf %12, %96 : vector<8x32xf32>
    %cst_49 = arith.constant dense<0.000000e+00> : vector<8xf32>
    %98 = vector.multi_reduction <add>, %97, %cst_49 [1] : vector<8x32xf32> to vector<8xf32>
    %99 = vector.shape_cast %98 : vector<8xf32> to vector<8x1xf32>
    %cst_50 = arith.constant 3.200000e+01 : f32
    %100 = vector.broadcast %cst_50 : f32 to vector<8x1xf32>
    %101 = arith.divf %99, %100 : vector<8x1xf32>
    %102 = vector.broadcast %101 : vector<8x1xf32> to vector<8x32xf32>
    %103 = arith.subf %97, %102 : vector<8x32xf32>
    %104 = arith.mulf %103, %103 : vector<8x32xf32>
    %cst_51 = arith.constant dense<0.000000e+00> : vector<8xf32>
    %105 = vector.multi_reduction <add>, %104, %cst_51 [1] : vector<8x32xf32> to vector<8xf32>
    %106 = vector.shape_cast %105 : vector<8xf32> to vector<8x1xf32>
    %cst_52 = arith.constant 3.200000e+01 : f32
    %107 = vector.broadcast %cst_52 : f32 to vector<8x1xf32>
    %108 = arith.divf %106, %107 : vector<8x1xf32>
    %109 = vector.broadcast %101 : vector<8x1xf32> to vector<8x32xf32>
    %110 = arith.subf %97, %109 : vector<8x32xf32>
    %cst_53 = arith.constant 9.99999997E-7 : f32
    %111 = vector.broadcast %cst_53 : f32 to vector<8x1xf32>
    %112 = arith.addf %108, %111 : vector<8x1xf32>
    %113 = math.rsqrt %112 : vector<8x1xf32>
    %114 = vector.broadcast %113 : vector<8x1xf32> to vector<8x32xf32>
    %115 = arith.mulf %110, %114 : vector<8x32xf32>
    %116 = vector.broadcast %6 : vector<1x32xf32> to vector<8x32xf32>
    %117 = arith.mulf %115, %116 : vector<8x32xf32>
    %118 = vector.broadcast %5 : vector<1x32xf32> to vector<8x32xf32>
    %119 = arith.addf %117, %118 : vector<8x32xf32>
    %c0_54 = arith.constant 0 : index
    %c0_55 = arith.constant 0 : index
    %120 = vector.load %arg11[%c0_54, %c0_55] : memref<32x128xf32, #tpu.memory_space<vmem>>, vector<32x128xf32>
    %cst_56 = arith.constant dense<0.000000e+00> : vector<8x128xf32>
    %121 = tpu.matmul %119, %120, %cst_56 {dimension_numbers = #tpu.dot_dimension_numbers<[1], [0], [0], [1], [0, 0, 1, 1], [], []>} : vector<8x32xf32>, vector<32x128xf32>, vector<8x128xf32> -> vector<8x128xf32>
    %c0_57 = arith.constant 0 : index
    %c0_58 = arith.constant 0 : index
    %122 = vector.load %arg12[%c0_57, %c0_58] : memref<1x128xf32, #tpu.memory_space<vmem>>, vector<1x128xf32>
    %123 = vector.broadcast %122 : vector<1x128xf32> to vector<8x128xf32>
    %124 = arith.addf %121, %123 : vector<8x128xf32>
    %cst_59 = arith.constant 5.000000e-01 : f32
    %125 = vector.broadcast %cst_59 : f32 to vector<8x128xf32>
    %126 = arith.mulf %125, %124 : vector<8x128xf32>
    %cst_60 = arith.constant 0.707106769 : f32
    %127 = vector.broadcast %cst_60 : f32 to vector<8x128xf32>
    %128 = arith.mulf %124, %127 : vector<8x128xf32>
    %129 = math.erf %128 : vector<8x128xf32>
    %cst_61 = arith.constant 1.000000e+00 : f32
    %130 = vector.broadcast %cst_61 : f32 to vector<8x128xf32>
    %131 = arith.addf %130, %129 : vector<8x128xf32>
    %132 = arith.mulf %126, %131 : vector<8x128xf32>
    %c0_62 = arith.constant 0 : index
    %c0_63 = arith.constant 0 : index
    %133 = vector.load %arg13[%c0_62, %c0_63] : memref<128x32xf32, #tpu.memory_space<vmem>>, vector<128x32xf32>
    %cst_64 = arith.constant dense<0.000000e+00> : vector<8x32xf32>
    %134 = tpu.matmul %132, %133, %cst_64 {dimension_numbers = #tpu.dot_dimension_numbers<[1], [0], [0], [1], [0, 0, 1, 1], [], []>} : vector<8x128xf32>, vector<128x32xf32>, vector<8x32xf32> -> vector<8x32xf32>
    %c0_65 = arith.constant 0 : index
    %c0_66 = arith.constant 0 : index
    %135 = vector.load %arg14[%c0_65, %c0_66] : memref<1x32xf32, #tpu.memory_space<vmem>>, vector<1x32xf32>
    %136 = vector.broadcast %135 : vector<1x32xf32> to vector<8x32xf32>
    %137 = arith.addf %134, %136 : vector<8x32xf32>
    %138 = vector.broadcast %7 : vector<1x32xf32> to vector<8x32xf32>
    %139 = arith.mulf %138, %137 : vector<8x32xf32>
    %140 = arith.addf %97, %139 : vector<8x32xf32>
    %c0_67 = arith.constant 0 : index
    %c0_68 = arith.constant 0 : index
    %c0_69 = arith.constant 0 : index
    %141 = vector.load %arg15[%c0_67, %c0_68, %c0_69] : memref<1x8x32xf32, #tpu.memory_space<vmem>>, vector<1x8x32xf32>
    %142 = vector.shape_cast %141 : vector<1x8x32xf32> to vector<8x32xf32>
    %143 = vector.shape_cast %140 : vector<8x32xf32> to vector<1x8x32xf32>
    tpu.vector_store %arg15[%c0_67, %c0_68, %c0_69], %143 {strides = array<i32>} : memref<1x8x32xf32, #tpu.memory_space<vmem>>, vector<1x8x32xf32>,
    return
  }
  func.func @transform_0(%arg0: i32, %arg1: i32) -> (i32, i32, i32) {
    %c0_i32 = arith.constant 0 : i32
    %c0_i32_0 = arith.constant 0 : i32
    return %arg0, %arg1, %c0_i32 : i32, i32, i32
  }
  func.func @transform_1(%arg0: i32, %arg1: i32) -> (i32, i32, i32) {
    %c0_i32 = arith.constant 0 : i32
    %c0_i32_0 = arith.constant 0 : i32
    %c0_i32_1 = arith.constant 0 : i32
    return %arg0, %c0_i32, %c0_i32_0 : i32, i32, i32
  }
  func.func @transform_2(%arg0: i32, %arg1: i32) -> (i32, i32, i32) {
    %c0_i32 = arith.constant 0 : i32
    %c0_i32_0 = arith.constant 0 : i32
    %c0_i32_1 = arith.constant 0 : i32
    return %arg0, %c0_i32, %c0_i32_0 : i32, i32, i32
  }
  func.func @transform_3(%arg0: i32, %arg1: i32) -> (i32, i32) {
    %c0_i32 = arith.constant 0 : i32
    %c0_i32_0 = arith.constant 0 : i32
    %c0_i32_1 = arith.constant 0 : i32
    return %c0_i32, %c0_i32_0 : i32, i32
  }
  func.func @transform_4(%arg0: i32, %arg1: i32) -> (i32, i32) {
    %c0_i32 = arith.constant 0 : i32
    %c0_i32_0 = arith.constant 0 : i32
    %c0_i32_1 = arith.constant 0 : i32
    return %c0_i32, %c0_i32_0 : i32, i32
  }
  func.func @transform_5(%arg0: i32, %arg1: i32) -> (i32, i32) {
    %c0_i32 = arith.constant 0 : i32
    %c0_i32_0 = arith.constant 0 : i32
    %c0_i32_1 = arith.constant 0 : i32
    return %c0_i32, %c0_i32_0 : i32, i32
  }
  func.func @transform_6(%arg0: i32, %arg1: i32) -> (i32, i32) {
    %c0_i32 = arith.constant 0 : i32
    %c0_i32_0 = arith.constant 0 : i32
    %c0_i32_1 = arith.constant 0 : i32
    return %c0_i32, %c0_i32_0 : i32, i32
  }
  func.func @transform_7(%arg0: i32, %arg1: i32) -> (i32, i32) {
    %c0_i32 = arith.constant 0 : i32
    %c0_i32_0 = arith.constant 0 : i32
    %c0_i32_1 = arith.constant 0 : i32
    return %c0_i32, %c0_i32_0 : i32, i32
  }
  func.func @transform_8(%arg0: i32, %arg1: i32) -> (i32, i32) {
    %c0_i32 = arith.constant 0 : i32
    %c0_i32_0 = arith.constant 0 : i32
    %c0_i32_1 = arith.constant 0 : i32
    return %c0_i32, %c0_i32_0 : i32, i32
  }
  func.func @transform_9(%arg0: i32, %arg1: i32) -> (i32, i32) {
    %c0_i32 = arith.constant 0 : i32
    %c0_i32_0 = arith.constant 0 : i32
    %c0_i32_1 = arith.constant 0 : i32
    return %c0_i32, %c0_i32_0 : i32, i32
  }
  func.func @transform_10(%arg0: i32, %arg1: i32) -> (i32, i32) {
    %c0_i32 = arith.constant 0 : i32
    %c0_i32_0 = arith.constant 0 : i32
    %c0_i32_1 = arith.constant 0 : i32
    return %c0_i32, %c0_i32_0 : i32, i32
  }
  func.func @transform_11(%arg0: i32, %arg1: i32) -> (i32, i32) {
    %c0_i32 = arith.constant 0 : i32
    %c0_i32_0 = arith.constant 0 : i32
    %c0_i32_1 = arith.constant 0 : i32
    return %c0_i32, %c0_i32_0 : i32, i32
  }
  func.func @transform_12(%arg0: i32, %arg1: i32) -> (i32, i32) {
    %c0_i32 = arith.constant 0 : i32
    %c0_i32_0 = arith.constant 0 : i32
    %c0_i32_1 = arith.constant 0 : i32
    return %c0_i32, %c0_i32_0 : i32, i32
  }
  func.func @transform_13(%arg0: i32, %arg1: i32) -> (i32, i32, i32) {
    %c0_i32 = arith.constant 0 : i32
    %c0_i32_0 = arith.constant 0 : i32
    return %arg0, %arg1, %c0_i32 : i32, i32, i32
  }
}

</mosaic_0001>

<bundles_post_ra>
// kernel: tpu_custom_call.1
= control target key start
LH: loop header
LB: loop body
LE: loop exit
PB: predicated region body
PF: predicated region fallthrough
CT: control target
= control target key end

     0   :  { %s1893_s0 = inlined_call_operand.vmem [shape: f32[2,8,32], index: 0, kind: input, shape index: {}]   ;;  %s1894_s1 = inlined_call_operand.vmem [shape: f32[2,8,32], index: 1, kind: input, shape index: {}]   ;;  %s1895_s2 = inlined_call_operand.vmem [shape: f32[2,6,32], index: 2, kind: input, shape index: {}]   ;;  %s1896_s3 = inlined_call_operand.vmem [shape: f32[32,32], index: 3, kind: input, shape index: {}]   ;;  %s1897_s4 = inlined_call_operand.vmem [shape: f32[1,32], index: 4, kind: input, shape index: {}]   ;;  %s1898_s5 = inlined_call_operand.vmem [shape: f32[32,64], index: 5, kind: input, shape index: {}]   ;;  %s1899_s6 = inlined_call_operand.vmem [shape: f32[1,64], index: 6, kind: input, shape index: {}]   ;;  %s1900_s7 = inlined_call_operand.vmem [shape: f32[32,32], index: 7, kind: input, shape index: {}]   ;;  %s1901_s8 = inlined_call_operand.vmem [shape: f32[1,32], index: 8, kind: input, shape index: {}]   ;;  %s1902_s9 = inlined_call_operand.vmem [shape: f32[32,128], index: 9, kind: input, shape index: {}]   ;;  %s1903_s10 = inlined_call_operand.vmem [shape: f32[1,128], index: 10, kind: input, shape index: {}]   ;;  %s1904_s11 = inlined_call_operand.vmem [shape: f32[128,32], index: 11, kind: input, shape index: {}]   ;;  %s1905_s12 = inlined_call_operand.vmem [shape: f32[1,32], index: 12, kind: input, shape index: {}]   ;;  %s1906_s13 = inlined_call_operand.hbm [shape: f32[2,8,32], index: 13, kind: output, shape index: {}]  }
   0x1   :  { %1909 = sst [smem:[#allocation10_spill]] %s1893_s0 }
   0x2   :  { %1910 = sst [smem:[#allocation11_spill]] %s1894_s1 }
   0x3   :  { %18 = vsyncpa [#allocation6], 0 }
   0x4   :  { %20 = vsyncpa [#allocation6 + $0x1], 0  ;;  %s1588_s25 = smov 0   ;;  %s1590_s26 = smov 0  }
   0x5   :  { %s1592_s27 = smov 0   ;;  %s1594_s28 = smov 0  }
   0x6   :  { %s1596_s29 = smov 0   ;;  %s1598_s30 = smov 0  }
   0x7 LB: > { %1911 = sst [smem:[#allocation8_spill]] %s1504_s29  ;;  %s1303_s14 = sadd.s32 4294967295, %s1508_s30   ;;  %s1508_s30 = sphi %s1598_s30, %s26_s30   ;;  %s1504_s29 = sphi %s1596_s29, %s1918_s29   ;;  %s1500_s28 = sphi %s1594_s28, %s1917_s28   ;;  %s1496_s27 = sphi %s1592_s27, %s1921_s27   ;;  %s1492_s26 = sphi %s1590_s26, %s1920_s26   ;;  %s1488_s25 = sphi %s1588_s25, %s1919_s25  }
   0x8   : > { %s1304_s15 = sadd.s32 4294967294, %s1508_s30   ;;  %s38_s16 = sadd.s32 1, %s1504_s29 }
   0x9   : > { %s337_s17 = sadd.s32 1, %s1496_s27  ;;  %p40_p0 = scmp.ge.s32.totalorder %s38_s16, 2 }
   0xa   : > { %p347_p1 = scmp.ne.s32.totalorder %s1496_s27, %s1492_s26  ;;  %p348_p2 = scmp.eq.s32.totalorder %s1303_s14, 1 }
   0xb   : > { %p353_p3 = scmp.ne.s32.totalorder %s1492_s26, %s1488_s25  ;;  %s1923_s16 = smov (%p40_p0, %s38_s16), 0 }
   0xc   : > { %1912 = sst [smem:[#allocation9_spill]] %s1923_s16  ;;  %p1628_p4 = por %p348_p2, %p347_p1 }
   0xd   : > { %p354_p5 = scmp.eq.s32.totalorder %s1304_s15, 1  ;;  %s332_s19 = ssub.s32 %s1504_s29, %s1923_s16 }
   0xe   : > { %p1307_p6 = scmp.ge.s32.totalorder %s1508_s30, 1  ;;  %p335_p7 = scmp.eq.s32.totalorder %s332_s19, 0 }
   0xf   : > { %p1635_p8 = por %p354_p5, %p353_p3  ;;  %p426_p9 = scmp.lt.s32.totalorder %s1508_s30, 3 }
  0x10   : > { %s1641_s21 = scalar_select %p335_p7, %s1496_s27, %s337_s17  }
  0x11   : > { %p427_p10 = pnand %p1307_p6, %p426_p9 }
  0x12   : > { %p480_p11 = scmp.lt.s32.totalorder (!%p427_p10), %s1500_s28, 1  ;;  %s1915_s0 = sld [smem:[#allocation10_spill]] (!%p427_p10) }
  0x13   : > { %430 = sbr.rel (%p427_p10) target bundleno = 1832 (0x728), region = 72  ;;  %s1916_s1 = sld [smem:[#allocation11_spill]] (!%p427_p10) }
  0x14   : > { %s1511_s24 = smov (!%p427_p10), 104   ;;  %s1512_s14 = smov (!%p427_p10), 112  }
  0x15   : > { %s1516_s29 = smov (!%p427_p10), 96  }
  0x18   : > { %s481_s22 = scalar_select %p480_p11, %s1500_s28, 1  ;;  %vm501_vm0 = vcmask 261120   ;;  %v1510_v4 = vmov 32.0   ;;  %v641_v21 = vld [vmem:[%s1896_s3 + $0x18] sm:$0xff]  ;;  %v640_v22 = vld [vmem:[%s1896_s3 + $0x10] sm:$0xff]  ;;  %v639_v23 = vld [vmem:[%s1896_s3 + $0x8] sm:$0xff] }
  0x19   : > { %1404 = vrcp.f32 %v1510_v4  ;;  %661 = vmatpush.msra.mxu2 %v641_v21  ;;  %v638_v24 = vld [vmem:[%s1896_s3] sm:$0xff]  ;;  %v538_v25 = vld [vmem:[%s1898_s5 + $0x18] sm:$0xff]  ;;  %v537_v26 = vld [vmem:[%s1898_s5 + $0x10] sm:$0xff]  ;;  %vm566_vm8 = vcmask 64512  }
  0x1a   : > { %s1645_s23 = sshll.u32 %s481_s22, 3  ;;  %558 = vmatpush.msra.mxu0 %v538_v25  ;;  %v536_v27 = vld [vmem:[%s1898_s5 + $0x8] sm:$0xff]  ;;  %v535_v30 = vld [vmem:[%s1898_s5] sm:$0xff] }
  0x1b   : > { %s486_s15 = scalar_lea.vmem %s1915_s0, %s1645_s23  ;;  %s490_s16 = scalar_lea.vmem %s1916_s1, %s1645_s23  ;;  %662 = vmatpush.msra.mxu2 %v640_v22  ;;  %v1399_v58 = vld [vmem:[%s1897_s4] ss:$0 sm:$0xff] }
  0x1c   : > { %v1651_v0 = vld [vmem:[%s486_s15] sm:$0xff]  ;;  %559 = vmatpush.msra.mxu0 %v537_v26  ;;  %s494_s17 = scalar_lea.vmem %s1895_s2, %s1645_s23  ;;  %s1513_s0 = smov 120  }
  0x1d   : > { %v605_v1 = vsel %vm501_vm0, %v1651_v0, 0.0  ;;  %v500_v2 = vld [vmem:[%s490_s16] sm:$0xff]  ;;  %663 = vmatpush.msra.mxu2 %v639_v23  ;;  %s1514_s15 = smov 88   ;;  %s1515_s1 = smov 80  }
  0x1e   : > { %606 = vadd.xlane.f32.xlu0 %v605_v1  ;;  %v502_v3 = vsel %vm501_vm0, %v500_v2, 0.0  ;;  %560 = vmatpush.msra.mxu0 %v536_v27  ;;  %v1697_v39 = vld [vmem:[%s494_s17] sm:$0x3f]  ;;  %s1517_s17 = smov 72  }
  0x1f   : > { %v1405_v5 = vpop.eup %1404  ;;  %664 = vmatpush.msra.mxu2 %v638_v24  ;;  %v531_v44 = vperm.slane %v1697_v39, 1  ;;  %v533_v47 = vperm.slane %v1697_v39, 0  ;;  %v1400_v59 = vld [vmem:[%s1899_s6] ss:$0 sm:$0xff] }
  0x20   : > { %v506_v6 = vmul.f32 32.0, %v1405_v5  ;;  %vm510_vm1 = vweird.f32 %v1405_v5  ;;  %561 = vmatpush.msra.mxu0 %v535_v30 }
  0x22   : > { %v507_v7 = vsub.f32 1.0, %v506_v6 }
  0x24   : > { %v508_v8 = vmul.f32 %v1405_v5, %v507_v7 }
  0x26   : > { %503 = vadd.xlane.f32.xlu0 %v502_v3  ;;  %v509_v9 = vadd.f32 %v1405_v5, %v508_v8 }
  0x28   : > { %v1660_v10 = vsel %vm510_vm1, %v1405_v5, %v509_v9 }
  0x91   : > { %v607_v11 = vpop.xlane.xlu0 %606 }
  0x92   : > { %v615_v12 = vmul.f32 %v607_v11, %v1660_v10 }
  0x94   : > { %v616_v13 = vsub.f32 %v1651_v0, %v615_v12 }
  0x96   : > { %v617_v14 = vmul.f32 %v616_v13, %v616_v13 }
  0x98   : > { %v618_v15 = vsel %vm501_vm0, %v617_v14, 0.0 }
  0x99   : > { %619 = vadd.xlane.f32.xlu1 %v618_v15  ;;  %v504_v16 = vpop.xlane.xlu0 %503 }
  0x9a   : > { %v512_v17 = vmul.f32 %v1660_v10, %v504_v16 }
  0x9c   : > { %v513_v18 = vsub.f32 %v500_v2, %v512_v17 }
  0x9e   : > { %v514_v19 = vmul.f32 %v513_v18, %v513_v18 }
  0xa0   : > { %v515_v20 = vsel %vm501_vm0, %v514_v19, 0.0 }
  0xa1   : > { %516 = vadd.xlane.f32.xlu1 %v515_v20 }
 0x10c   : > { %v620_v28 = vpop.xlane.xlu1 %619 }
 0x10d   : > { %v621_v29 = vmul.f32 %v620_v28, %v1660_v10 }
 0x10f   : > { %v622_v31 = vadd.f32 1e-06, %v621_v29 }
 0x111   : > { %1406 = vrsqrt.f32 %v622_v31  ;;  %vm629_vm3 = vweird.f32 %v622_v31 }
 0x114   : > { %v517_v32 = vpop.xlane.xlu1 %516 }
 0x115   : > { %v518_v33 = vmul.f32 %v517_v32, %v1660_v10 }
 0x117   : > { %v1407_v34 = vpop.eup %1406  ;;  %v519_v35 = vadd.f32 1e-06, %v518_v33 }
 0x118   : > { %v624_v36 = vmul.f32 %v1407_v34, %v622_v31  ;;  %vm630_vm2 = vweird.f32 %v1407_v34 }
 0x119   : > { %1408 = vrsqrt.f32 %v519_v35  ;;  %vm631_vm4 = vmor %vm629_vm3, %vm630_vm2  ;;  %vm526_vm6 = vweird.f32 %v519_v35 }
 0x11a   : > { %v625_v37 = vmul.f32 %v1407_v34, %v624_v36 }
 0x11c   : > { %v626_v38 = vmul.f32 0.5, %v625_v37 }
 0x11e   : > { %v627_v40 = vsub.f32 1.5, %v626_v38 }
 0x11f   : > { %v1409_v41 = vpop.eup %1408 }
 0x120   : > { %v628_v42 = vmul.f32 %v1407_v34, %v627_v40  ;;  %v521_v43 = vmul.f32 %v1409_v41, %v519_v35  ;;  %vm527_vm5 = vweird.f32 %v1409_v41 }
 0x121   : > { %vm528_vm7 = vmor %vm526_vm6, %vm527_vm5 }
 0x122   : > { %v632_v45 = vsel %vm631_vm4, %v1407_v34, %v628_v42  ;;  %v522_v46 = vmul.f32 %v1409_v41, %v521_v43 }
 0x123   : > { %v633_v48 = vmul.f32 %v632_v45, %v616_v13 }
 0x124   : > { %v523_v49 = vmul.f32 0.5, %v522_v46 }
 0x125   : > { %v635_v50 = vmul.f32 %v633_v48, %v531_v44 }
 0x126   : > { %v524_v51 = vsub.f32 1.5, %v523_v49 }
 0x127   : > { %v637_v52 = vadd.f32 %v635_v50, %v533_v47 }
 0x128   : > { %v525_v53 = vmul.f32 %v1409_v41, %v524_v51 }
 0x129   : > { %1313 = vmatmul.msk.f32.vlgmr.msra.gmra.mxu2 %vm501_vm0, %v637_v52 }
 0x12a   : > { %v529_v54 = vsel %vm528_vm7, %v1409_v41, %v525_v53 }
 0x12b   : > { %v530_v55 = vmul.f32 %v529_v54, %v513_v18 }
 0x12d   : > { %v532_v56 = vmul.f32 %v531_v44, %v530_v55 }
 0x12f   : > { %v534_v57 = vadd.f32 %v533_v47, %v532_v56 }
 0x131   : > { %1312 = vmatmul.msk.f32.vlgmr.msra.gmra.mxu0 %vm501_vm0, %v534_v57 }
 0x1ac   : > { %v666_v60 = vpop.f32.mrf.mxu2 }
 0x1ad   : > { %v667_v61 = vadd.f32 %v1399_v58, %v666_v60 }
 0x1ae   : > { %v563_v62 = vpop.f32.mrf.mxu0 }
 0x1af   : > { %v669_v63 = vmul.f32 0.35355338, %v667_v61  ;;  %v1709_v1 = vadd.f32 %v1400_v59, %v563_v62 }
 0x1b1   : > { %671 = vst.msk [vmem:[#allocation2] sm:$0xff] %vm566_vm8, %v669_v63  ;;  %593 = vrot.lane.b32.xlu1 %v1709_v1, %s1511_s24  ;;  %583 = vrot.lane.b32.xlu0 %v1709_v1, %s1512_s14 }
 0x1b2   : > { %567 = vst.msk [vmem:[#allocation3] sm:$0xff] %vm566_vm8, %v1709_v1  ;;  %573 = vrot.lane.b32.xlu2 %v1709_v1, %s1513_s0 }
 0x1b8   : > { %v688_v3 = vld [vmem:[#allocation2] sm:$0xff] }
 0x1b9   : > { %v692_v2 = vld [vmem:[#allocation3] sm:$0xff] }
 0x1ba   : > { %673 = vrot.lane.b32.xlu2 %v669_v63, %s1513_s0  ;;  %1314 = vmatpush.xpose.msk.msrb.mxu2 %vm566_vm8, %v692_v2 }
 0x1bd   : > { %1315 = vmatmul.msk.f32.vlgmr.msrb.gmra.mxu2 %vm566_vm8, %v688_v3  ;;  %v941_v3 = vld [vmem:[%s1900_s7 + $0x8] sm:$0xff] }
 0x1c2   : > { %678 = vrot.lane.b32.xlu2 %v669_v63, %s1512_s14 }
 0x1ca   : > { %683 = vrot.lane.b32.xlu2 %v669_v63, %s1511_s24 }
 0x20c   : > { %v574_v4 = vpop.permute.xlu2 %573 }
 0x20d   : > { %577 = vst.msk [vmem:[#allocation3 + $0x8] sm:$0xff] %vm566_vm8, %v574_v4  ;;  %v940_v4 = vld [vmem:[%s1900_s7] sm:$0xff] }
 0x20e   : > { %983 = vmatpush.msra.mxu1 %v940_v4 }
 0x214   : > { %v674_v5 = vpop.permute.xlu2 %673  ;;  %v693_v6 = vld [vmem:[#allocation3 + $0x8] sm:$0xff] }
 0x215   : > { %677 = vst.msk [vmem:[#allocation2 + $0x8] sm:$0xff] %vm566_vm8, %v674_v5  ;;  %1316 = vmatpush.xpose.msk.msra.mxu3 %vm566_vm8, %v693_v6  ;;  %v988_v5 = vld [vmem:[%s1900_s7 + $0x10] sm:$0xff] }
 0x21c   : > { %v679_v7 = vpop.permute.xlu2 %678  ;;  %v689_v8 = vld [vmem:[#allocation2 + $0x8] sm:$0xff] }
 0x21d   : > { %682 = vst.msk [vmem:[#allocation2 + $0x10] sm:$0xff] %vm566_vm8, %v679_v7  ;;  %1317 = vmatmul.msk.f32.vlgmr.msra.gmra.mxu3 %vm566_vm8, %v689_v8 }
 0x223   : > { %v594_v9 = vpop.permute.xlu1 %593  ;;  %v584_v11 = vpop.permute.xlu0 %583 }
 0x224   : > { %597 = vst.msk [vmem:[#allocation3 + $0x18] sm:$0xff] %vm566_vm8, %v594_v9  ;;  %v684_v12 = vpop.permute.xlu2 %683  ;;  %v690_v16 = vld [vmem:[#allocation2 + $0x10] sm:$0xff]  ;;  %v1013_v9 = vld [vmem:[%s1900_s7 + $0x18] sm:$0xff] }
 0x225   : > { %587 = vst.msk [vmem:[#allocation3 + $0x10] sm:$0xff] %vm566_vm8, %v584_v11 }
 0x226   : > { %687 = vst.msk [vmem:[#allocation2 + $0x18] sm:$0xff] %vm566_vm8, %v684_v12 }
 0x22b   : > { %v695_v13 = vld [vmem:[#allocation3 + $0x18] sm:$0xff] }
 0x22c   : > { %v694_v14 = vld [vmem:[#allocation3 + $0x10] sm:$0xff]  ;;  %1320 = vmatpush.xpose.msk.msrb.mxu3 %vm566_vm8, %v695_v13 }
 0x22d   : > { %1318 = vmatpush.xpose.msk.msra.mxu2 %vm566_vm8, %v694_v14  ;;  %v691_v15 = vld [vmem:[#allocation2 + $0x18] sm:$0xff] }
 0x22f   : > { %1321 = vmatmul.msk.f32.vlgmr.msrb.gmra.mxu3 %vm566_vm8, %v691_v15 }
 0x230   : > { %1319 = vmatmul.msk.f32.vlgmr.msra.gmra.mxu2 %vm566_vm8, %v690_v16 }
 0x240   : > { %v719_v19 = vpop.f32.mrf.mxu2 }
 0x241   : > { %v800_v20 = vsel %vm566_vm8, %v719_v19, -inf }
 0x2a0   : > { %v745_v17 = vpop.f32.mrf.mxu3 }
 0x2a1   : > { %v803_v18 = vsel %vm566_vm8, %v745_v17, -inf }
 0x2a2   : > { %804 = vmax.xlane.f32.xlu2 %v803_v18 }
 0x2aa   : > { %801 = vmax.xlane.f32.xlu2 %v800_v20  ;;  %v1043_v20 = vperm.slane %v1697_v39, 2 }
 0x2b2   : > { %v797_v21 = vpop.f32.mrf.mxu3 }
 0x2b3   : > { %v771_v22 = vpop.f32.mrf.mxu2  ;;  %v809_v23 = vsel %vm566_vm8, %v797_v21, -inf }
 0x2b4   : > { %810 = vmax.xlane.f32.xlu1 %v809_v23  ;;  %v806_v24 = vsel %vm566_vm8, %v771_v22, -inf }
 0x2b5   : > { %807 = vmax.xlane.f32.xlu0 %v806_v24 }
 0x2c2   : > { %578 = vrot.lane.b32.xlu2 %v1709_v1, %s1514_s15 }
 0x2c9   : > { %588 = vrot.lane.b32.xlu0 %v1709_v1, %s1515_s1  ;;  %s477_s1 = sand.u32 1, %s1492_s26  }
 0x315   : > { %v805_v25 = vpop.xlane.xlu2 %804 }
 0x316   : > { %v813_v26 = vsub.f32 %v745_v17, %v805_v25  ;;  %v1401_v17 = vld [vmem:[%s1901_s8] ss:$0 sm:$0xff] }
 0x318   : > { %v818_v27 = vmul.f32 1.442695, %v813_v26 }
 0x31a   : > { %1410 = vpow2.f32 %v818_v27 }
 0x31d   : > { %v802_v28 = vpop.xlane.xlu2 %801 }
 0x31e   : > { %v812_v29 = vsub.f32 %v719_v19, %v802_v28 }
 0x320   : > { %v1411_v30 = vpop.eup %1410  ;;  %v816_v31 = vmul.f32 1.442695, %v812_v29 }
 0x321   : > { %v827_v32 = vsel %vm566_vm8, %v1411_v30, 0.0 }
 0x322   : > { %1412 = vpow2.f32 %v816_v31  ;;  %828 = vadd.xlane.f32.xlu0 %v827_v32  ;;  %v1073_v31 = vld [vmem:[%s1902_s9 + $0x8] sm:$0xff]  ;;  %v1072_v32 = vld [vmem:[%s1902_s9] sm:$0xff] }
 0x325   : > { %v579_v33 = vpop.permute.xlu2 %578 }
 0x326   : > { %582 = vst.msk [vmem:[#allocation4 + $0x8] sm:$0xff] %vm566_vm8, %v579_v33 }
 0x327   : > { %v811_v35 = vpop.xlane.xlu1 %810 }
 0x328   : > { %v1413_v34 = vpop.eup %1412  ;;  %v808_v36 = vpop.xlane.xlu0 %807  ;;  %v815_v40 = vsub.f32 %v797_v21, %v811_v35 }
 0x329   : > { %v814_v37 = vsub.f32 %v771_v22, %v808_v36  ;;  %v824_v38 = vsel %vm566_vm8, %v1413_v34, 0.0 }
 0x32a   : > { %825 = vadd.xlane.f32.xlu2 %v824_v38  ;;  %v822_v43 = vmul.f32 1.442695, %v815_v40 }
 0x32b   : > { %v820_v41 = vmul.f32 1.442695, %v814_v37 }
 0x32d   : > { %1414 = vpow2.f32 %v820_v41  ;;  %v845_v42 = vld [vmem:[#allocation4 + $0x8] sm:$0xff] }
 0x32e   : > { %889 = vmatpush.msra.mxu3 %v845_v42  ;;  %1416 = vpow2.f32 %v822_v43  ;;  %v1068_v43 = vperm.slane %v1697_v39, 4 }
 0x333   : > { %v1415_v44 = vpop.eup %1414 }
 0x334   : > { %v830_v45 = vsel %vm566_vm8, %v1415_v44, 0.0  ;;  %v1417_v46 = vpop.eup %1416 }
 0x335   : > { %831 = vadd.xlane.f32.xlu1 %v830_v45  ;;  %v833_v48 = vsel %vm566_vm8, %v1417_v46, 0.0 }
 0x336   : > { %569 = vrot.lane.b32.xlu0 %v1709_v1, %s1516_s29  ;;  %s1308_s29 = sshll.u32 %s477_s1, 3 }
 0x337   : > { %s479_s14 = scalar_lea.vmem [#allocation5], %s1308_s29  ;;  %s1450_s29 = scalar_lea.hbm %s1906_s13, 16 }
 0x338   : > { %s1205_s0 = sshll.u32 %s479_s14, 4  ;;  %s1206_s0 = int_to_ptr.vmem [resolvable:$true] %s1205_s0 }
 0x33b   : > { %v589_v47 = vpop.permute.xlu0 %588 }
 0x33c   : > { %592 = vst.msk [vmem:[#allocation4 + $0x10] sm:$0xff] %vm566_vm8, %v589_v47 }
 0x33d   : > { %834 = vadd.xlane.f32.xlu1 %v833_v48 }
 0x343   : > { %v846_v49 = vld [vmem:[#allocation4 + $0x10] sm:$0xff] }
 0x344   : > { %912 = vmatpush.msrb.mxu2 %v846_v49  ;;  %v1161_v49 = vld [vmem:[%s1904_s11 + $0x70] sm:$0xff] }
 0x346   : > { %1007 = vmatpush.msra.mxu2 %v988_v5  ;;  %v1152_v5 = vld [vmem:[%s1904_s11 + $0x28] sm:$0xff] }
 0x356   : > { %598 = vrot.lane.b32.xlu1 %v1709_v1, %s1517_s17  ;;  %s1333_s17 = sshll.u32 %s1500_s28, 3  ;;  %s1192_s28 = scalar_lea.sflag [#allocation6], %s477_s1 }
 0x357   : > { %s1203_s24 = scalar_lea.hbm %s1906_s13, %s1333_s17 }
 0x358   : > { %s1207_s15 = sshll.u32 %s1203_s24, 4  ;;  %s1208_s15 = int_to_ptr.hbm [resolvable:$true] %s1207_s15 }
 0x359   : > { %s1444_s23 = sshra.s32 %s1208_s15, 4  ;;  %s1445_s23 = int_to_ptr.hbm [resolvable:$true] %s1444_s23 }
 0x35a   : > { %s1446_s19 = scalar_lea.hbm %s1445_s23, 8  ;;  %p1451_p1 = scmp.lt.s32.totalorder %s1445_s23, %s1906_s13 }
 0x35b   : > { %p1447_p12 = scmp.ne.s32.totalorder %s1445_s23, %s1446_s19  ;;  %p1452_p2 = scmp.lt.s32.totalorder %s1450_s29, %s1446_s19 }
 0x35d   : > { %p1448_p13 = pnand %p1447_p12, %p1628_p4  ;;  %p1453_p3 = por %p1452_p2, %p1451_p1 }
 0x35f   : > { %p1449_p0 = pneg %p1448_p13 }
 0x361   : > { %p1454_p5 = pnand %p1453_p3, %p1449_p0 }
 0x395   : > { %v829_v50 = vpop.xlane.xlu0 %828 }
 0x396   : > { %1418 = vrcp.f32 %v829_v50  ;;  %v1160_v50 = vld [vmem:[%s1904_s11 + $0x68] sm:$0xff] }
 0x39c   : > { %v1419_v51 = vpop.eup %1418 }
 0x39d   : > { %v841_v52 = vmul.f32 %v1419_v51, %v1411_v30  ;;  %v826_v53 = vpop.xlane.xlu2 %825  ;;  %v1075_v30 = vld [vmem:[%s1902_s9 + $0x18] sm:$0xff]  ;;  %v1402_v51 = vld [vmem:[%s1903_s10] ss:$0 sm:$0xff] }
 0x39e   : > { %1420 = vrcp.f32 %v826_v53  ;;  %v1158_v53 = vld [vmem:[%s1904_s11 + $0x58] sm:$0xff] }
 0x39f   : > { %1323 = vmatmul.msk.f32.vlgmr.msra.gmra.mxu3 %vm566_vm8, %v841_v52  ;;  %v1159_v52 = vld [vmem:[%s1904_s11 + $0x60] sm:$0xff] }
 0x3a4   : > { %v1421_v56 = vpop.eup %1420 }
 0x3a5   : > { %v840_v58 = vmul.f32 %v1421_v56, %v1413_v34  ;;  %v1157_v56 = vld [vmem:[%s1904_s11 + $0x50] sm:$0xff] }
 0x3a8   : > { %v832_v54 = vpop.xlane.xlu1 %831  ;;  %v570_v55 = vpop.permute.xlu0 %569 }
 0x3a9   : > { %1422 = vrcp.f32 %v832_v54  ;;  %572 = vst.msk [vmem:[#allocation4] sm:$0xff] %vm566_vm8, %v570_v55 }
 0x3af   : > { %v1423_v57 = vpop.eup %1422 }
 0x3b0   : > { %v842_v59 = vmul.f32 %v1423_v57, %v1415_v44  ;;  %v844_v60 = vld [vmem:[#allocation4] sm:$0xff]  ;;  %v835_v61 = vpop.xlane.xlu1 %834 }
 0x3b1   : > { %866 = vmatpush.msrb.mxu0 %v844_v60  ;;  %1424 = vrcp.f32 %v835_v61  ;;  %v1155_v60 = vld [vmem:[%s1904_s11 + $0x40] sm:$0xff] }
 0x3b2   : > { %1322 = vmatmul.msk.f32.vlgmr.msrb.gmra.mxu0 %vm566_vm8, %v840_v58  ;;  %1324 = vmatmul.msk.f32.vlgmr.msrb.gmra.mxu2 %vm566_vm8, %v842_v59  ;;  %v1156_v58 = vld [vmem:[%s1904_s11 + $0x48] sm:$0xff] }
 0x3b3   : > { %960 = vmatpush.msra.mxu0 %v941_v3 }
 0x3b5   : > { %1095 = vmatpush.msrb.mxu0 %v1075_v30 }
 0x3b7   : > { %v1425_v63 = vpop.eup %1424 }
 0x3b8   : > { %v843_v1 = vmul.f32 %v1425_v63, %v1417_v46  ;;  %v1070_v46 = vperm.slane %v1697_v39, 3 }
 0x3c8   : > { %v599_v62 = vpop.permute.xlu1 %598 }
 0x3c9   : > { %602 = vst.msk [vmem:[#allocation4 + $0x18] sm:$0xff] %vm566_vm8, %v599_v62  ;;  %v1154_v62 = vld [vmem:[%s1904_s11 + $0x38] sm:$0xff] }
 0x3d0   : > { %v847_v2 = vld [vmem:[#allocation4 + $0x18] sm:$0xff] }
 0x3d1   : > { %935 = vmatpush.msrb.mxu3 %v847_v2  ;;  %v1153_v2 = vld [vmem:[%s1904_s11 + $0x30] sm:$0xff] }
 0x3d2   : > { %1325 = vmatmul.msk.f32.vlgmr.msrb.gmra.mxu3 %vm566_vm8, %v843_v1 }
 0x3d3   : > { %1032 = vmatpush.msra.mxu3 %v1013_v9  ;;  %v1150_v9 = vld [vmem:[%s1904_s11 + $0x18] sm:$0xff] }
 0x422   : > { %v891_v6 = vpop.f32.mrf.mxu3 }
 0x423   : > { %1326 = vmatmul.msk.f32.vlgmr.msra.gmra.mxu0 %vm566_vm8, %v891_v6 }
 0x42f   : > { %v868_v7 = vpop.f32.mrf.mxu0 }
 0x430   : > { %1327 = vmatmul.msk.f32.vlgmr.msra.gmra.mxu1 %vm566_vm8, %v868_v7 }
 0x435   : > { %v914_v8 = vpop.f32.mrf.mxu2 }
 0x436   : > { %1328 = vmatmul.msk.f32.vlgmr.msra.gmra.mxu2 %vm566_vm8, %v914_v8  ;;  %v1151_v8 = vld [vmem:[%s1904_s11 + $0x20] sm:$0xff] }
 0x455   : > { %v937_v11 = vpop.f32.mrf.mxu3 }
 0x456   : > { %1329 = vmatmul.msk.f32.vlgmr.msra.gmra.mxu3 %vm566_vm8, %v937_v11 }
 0x4a0   : > { %v962_v13 = vpop.f32.mrf.mxu0 }
 0x4ad   : > { %v985_v12 = vpop.f32.mrf.mxu1 }
 0x4ae   : > { %v986_v15 = vadd.f32 %v985_v12, %v962_v13  ;;  %v1149_v12 = vld [vmem:[%s1904_s11 + $0x10] sm:$0xff] }
 0x4b9   : > { %v1009_v14 = vpop.f32.mrf.mxu2 }
 0x4ba   : > { %v1012_v16 = vadd.f32 %v1009_v14, %v986_v15  ;;  %v1148_v15 = vld [vmem:[%s1904_s11 + $0x8] sm:$0xff] }
 0x4d9   : > { %v1034_v18 = vpop.f32.mrf.mxu3 }
 0x4da   : > { %v1037_v19 = vadd.f32 %v1034_v18, %v1012_v16 }
 0x4dc   : > { %v1042_v21 = vadd.f32 %v1401_v17, %v1037_v19  ;;  %v1147_v17 = vld [vmem:[%s1904_s11] sm:$0xff] }
 0x4de   : > { %v1044_v22 = vmul.f32 %v1043_v20, %v1042_v21 }
 0x4e0   : > { %v1772_v23 = vadd.f32 %v1044_v22, %v1651_v0  ;;  %v1074_v0 = vld [vmem:[%s1902_s9 + $0x10] sm:$0xff] }
 0x4e1   : > { %1096 = vmatpush.msrb.mxu0 %v1074_v0 }
 0x4e2   : > { %v1046_v24 = vsel %vm501_vm0, %v1772_v23, 0.0 }
 0x4e3   : > { %1047 = vadd.xlane.f32.xlu0 %v1046_v24  ;;  %1097 = vmatpush.msrb.mxu0 %v1073_v31 }
 0x4e5   : > { %1098 = vmatpush.msrb.mxu0 %v1072_v32 }
 0x556   : > { %v1048_v25 = vpop.xlane.xlu0 %1047 }
 0x557   : > { %v1049_v26 = vmul.f32 %v1048_v25, %v1660_v10 }
 0x559   : > { %v1050_v27 = vsub.f32 %v1772_v23, %v1049_v26 }
 0x55b   : > { %v1051_v28 = vmul.f32 %v1050_v27, %v1050_v27 }
 0x55d   : > { %v1052_v29 = vsel %vm501_vm0, %v1051_v28, 0.0 }
 0x55e   : > { %1053 = vadd.xlane.f32.xlu1 %v1052_v29 }
 0x5d1   : > { %v1054_v33 = vpop.xlane.xlu1 %1053 }
 0x5d2   : > { %v1055_v34 = vmul.f32 %v1054_v33, %v1660_v10  ;;  %v1162_v10 = vld [vmem:[%s1904_s11 + $0x78] sm:$0xff] }
 0x5d3   : > { %1167 = vmatpush.msrb.mxu1 %v1162_v10 }
 0x5d4   : > { %v1056_v35 = vadd.f32 1e-06, %v1055_v34 }
 0x5d5   : > { %1168 = vmatpush.msrb.mxu1 %v1161_v49 }
 0x5d6   : > { %1426 = vrsqrt.f32 %v1056_v35  ;;  %vm1063_vm10 = vweird.f32 %v1056_v35 }
 0x5d7   : > { %1169 = vmatpush.msrb.mxu1 %v1160_v50 }
 0x5d9   : > { %1170 = vmatpush.msrb.mxu1 %v1159_v52 }
 0x5db   : > { %1171 = vmatpush.msrb.mxu1 %v1158_v53 }
 0x5dc   : > { %v1427_v36 = vpop.eup %1426 }
 0x5dd   : > { %v1058_v37 = vmul.f32 %v1427_v36, %v1056_v35  ;;  %vm1064_vm9 = vweird.f32 %v1427_v36  ;;  %1172 = vmatpush.msrb.mxu1 %v1157_v56 }
 0x5de   : > { %vm1065_vm11 = vmor %vm1063_vm10, %vm1064_vm9 }
 0x5df   : > { %v1059_v38 = vmul.f32 %v1427_v36, %v1058_v37  ;;  %1173 = vmatpush.msrb.mxu1 %v1156_v58 }
 0x5e1   : > { %v1060_v40 = vmul.f32 0.5, %v1059_v38  ;;  %1174 = vmatpush.msrb.mxu1 %v1155_v60 }
 0x5e3   : > { %v1061_v41 = vsub.f32 1.5, %v1060_v40  ;;  %1175 = vmatpush.msrb.mxu1 %v1154_v62 }
 0x5e5   : > { %v1062_v42 = vmul.f32 %v1427_v36, %v1061_v41  ;;  %1176 = vmatpush.msrb.mxu1 %v1153_v2 }
 0x5e7   : > { %v1066_v44 = vsel %vm1065_vm11, %v1427_v36, %v1062_v42  ;;  %1177 = vmatpush.msrb.mxu1 %v1152_v5 }
 0x5e8   : > { %v1067_v45 = vmul.f32 %v1066_v44, %v1050_v27 }
 0x5e9   : > { %1178 = vmatpush.msrb.mxu1 %v1151_v8 }
 0x5ea   : > { %v1069_v47 = vmul.f32 %v1068_v43, %v1067_v45  ;;  %v1403_v45 = vld [vmem:[%s1905_s12] ss:$0 sm:$0xff] }
 0x5eb   : > { %1179 = vmatpush.msrb.mxu1 %v1150_v9 }
 0x5ec   : > { %v1071_v48 = vadd.f32 %v1070_v46, %v1069_v47  ;;  %v1187_v46 = vperm.slane %v1697_v39, 5 }
 0x5ed   : > { %1180 = vmatpush.msrb.mxu1 %v1149_v12 }
 0x5ee   : > { %1330 = vmatmul.msk.f32.vlgmr.msrb.gmra.mxu0 %vm501_vm0, %v1071_v48 }
 0x5ef   : > { %1181 = vmatpush.msrb.mxu1 %v1148_v15 }
 0x5f1   : > { %1182 = vmatpush.msrb.mxu1 %v1147_v17 }
 0x66b   : > { %v1100_v54 = vpop.f32.mrf.mxu0 }
 0x66c   : > { %v1813_v55 = vadd.f32 %v1402_v51, %v1100_v54 }
 0x66e   : > { %v1104_v57 = vmul.f32 0.70710677, %v1813_v55  ;;  %v1103_v42 = vmul.f32 0.5, %v1813_v55 }
 0x670   : > { %v1105_v59 = vmul.f32 %v1104_v57, %v1104_v57 }
 0x672   : > { %v1106_v61 = vmin.f32 %v1105_v59, 16.0 }
 0x674   : > { %v1107_v63 = vmul.f32 2.1237322e-06, %v1106_v61  ;;  %v1118_v1 = vmul.f32 3.8918573e-05, %v1106_v61 }
 0x676   : > { %v1108_v3 = vadd.f32 0.00028619796, %v1107_v63  ;;  %v1119_v4 = vadd.f32 0.001143296, %v1118_v1 }
 0x678   : > { %v1109_v6 = vmul.f32 %v1108_v3, %v1106_v61  ;;  %v1120_v7 = vmul.f32 %v1119_v4, %v1106_v61 }
 0x67a   : > { %v1121_v11 = vadd.f32 0.014752088, %v1120_v7  ;;  %v1110_v13 = vadd.f32 0.0036580483, %v1109_v6 }
 0x67c   : > { %v1122_v14 = vmul.f32 %v1121_v11, %v1106_v61  ;;  %v1111_v18 = vmul.f32 %v1110_v13, %v1106_v61 }
 0x67e   : > { %v1123_v16 = vadd.f32 0.112945676, %v1122_v14  ;;  %v1112_v21 = vadd.f32 0.05243302, %v1111_v18 }
 0x680   : > { %v1124_v19 = vmul.f32 %v1123_v16, %v1106_v61  ;;  %v1113_v25 = vmul.f32 %v1112_v21, %v1106_v61 }
 0x682   : > { %v1125_v20 = vadd.f32 0.4994258, %v1124_v19  ;;  %v1114_v26 = vadd.f32 0.18741608, %v1113_v25 }
 0x684   : > { %v1126_v22 = vmul.f32 %v1125_v20, %v1106_v61  ;;  %v1115_v28 = vmul.f32 %v1114_v26, %v1106_v61 }
 0x686   : > { %v1127_v24 = vadd.f32 1.0, %v1126_v22  ;;  %v1116_v31 = vadd.f32 1.1283791, %v1115_v28 }
 0x688   : > { %1428 = vrcp.f32 %v1127_v24  ;;  %v1139_v0 = vand.u32 2147483648, %v1127_v24  ;;  %v1137_v33 = vand.u32 2147483647, %v1127_v24  ;;  %vm1133_vm13 = vweird.f32 %v1127_v24 }
 0x689   : > { %v1117_v36 = vmul.f32 %v1116_v31, %v1104_v57 }
 0x68a   : > { %v1140_v35 = vor.u32 1.1754944e-38, %v1139_v0  ;;  %vm1138_vm15 = vcmp.eq.f32.partialorder %v1137_v33, 8.507059e+37 }
 0x68e   : > { %v1429_v27 = vpop.eup %1428 }
 0x68f   : > { %v1129_v29 = vmul.f32 %v1429_v27, %v1127_v24  ;;  %vm1134_vm12 = vweird.f32 %v1429_v27 }
 0x690   : > { %vm1135_vm14 = vmor %vm1133_vm13, %vm1134_vm12 }
 0x691   : > { %v1130_v30 = vsub.f32 1.0, %v1129_v29 }
 0x693   : > { %v1131_v32 = vmul.f32 %v1429_v27, %v1130_v30 }
 0x695   : > { %v1132_v34 = vadd.f32 %v1429_v27, %v1131_v32 }
 0x697   : > { %v1136_v37 = vsel %vm1135_vm14, %v1429_v27, %v1132_v34 }
 0x698   : > { %v1141_v38 = vsel %vm1138_vm15, %v1140_v35, %v1136_v37 }
 0x699   : > { %v1142_v40 = vmul.f32 %v1141_v38, %v1117_v36 }
 0x69b   : > { %v1331_v41 = vclamps-f32 %v1142_v40, 1.0 }
 0x69d   : > { %v1145_v43 = vadd.f32 1.0, %v1331_v41 }
 0x69f   : > { %v1146_v44 = vmul.f32 %v1145_v43, %v1103_v42 }
 0x6a1   : > { %1183 = vmatmul.f32.vlgmr.msrb.gmra.mxu1 %v1146_v44 }
 0x71e   : > { %v1184_v47 = vpop.f32.mrf.mxu1 }
 0x71f   : > { %v1185_v48 = vadd.f32 %v1403_v45, %v1184_v47 }
 0x721   : > { %v1188_v10 = vmul.f32 %v1187_v46, %v1185_v48 }
 0x723   : > { %v1189_v49 = vadd.f32 %v1188_v10, %v1772_v23 }
 0x725   : > { %1190 = vst.msk [vmem:[%s479_s14] sm:$0xff] %vm501_vm0, %v1189_v49 }
 0x726   : > { %1457 = shalt.err (!%p1454_p5)
}
 0x727   : > { %1336 = dma.vmem_to_hbm [thread:$0]  (%p1628_p4), %s1206_s0, 128, %s1208_s15, %s1192_s28  }
 0x728 PF: > { %p1342_p6 = scmp.ge.s32.totalorder %s1508_s30, 2  ;;  %s1219_s1 = sand.u32 1, %s1488_s25  }
 0x729   : > { %s1220_s14 = scalar_lea.sflag [#allocation6], %s1219_s1 }
 0x72a   : > { %p1339_p7 = pnand %p1342_p6, %p1635_p8 }
 0x72c   : > { %p1340_p9 = pneg %p1339_p7 }
 0x72e   : > { %1483 = dma.done.wait (%p1340_p9), %s1220_s14, 128  }
 0x72f   : > { %1485 = vsyncadd (%p1340_p9), %s1220_s14, 4294967168  ;;  %s26_s30 = sadd.s32 1, %s1508_s30   ;;  %s1917_s28 = sld [smem:[#allocation8_spill]] }
 0x730   : > { %p23_p10 = scmp.ge.s32.totalorder %s26_s30, 4   ;;  %s1918_s29 = sld [smem:[#allocation9_spill]] }
 0x731   : > { %s1919_s25 = smov %s1492_s26  ;;  %s1920_s26 = smov %s1496_s27 }
 0x732   : > { %s1921_s27 = smov %s1641_s21  ;;  %25 = sbr.rel (!%p23_p10) target bundleno = 7 (0x7), region = 126 }
 0x737   :  { %1226 = vsyncpa [#allocation6], 1 }
 0x738   :  { %1228 = vsyncpa [#allocation6 + $0x1], 1 }

</bundles_post_ra>
